<compile_context>
chip_gen: v7x
topology: tpu7x:2x2x1
jax: 0.10.0
libtpu: 0.0.40
codegen_flags: <defaults>
</compile_context>

<pallas_src>
import functools

import jax
import jax.numpy as jnp
from jax import lax
from jax.experimental import pallas as pl
from jax.experimental.pallas import tpu as pltpu


# Worst-case double-buffered VMEM budget for one grid step (conservatively assumes the
# narrow Cin minor dim of the feat block is lane-padded to 128 in VMEM).
_VMEM_BUDGET_BYTES = 24 * 1024 * 1024
# Requested scoped-VMEM limit: > v5e's 16 MiB default, well under v7x's 64 MiB physical.
_VMEM_LIMIT_BYTES = 28 * 1024 * 1024
# Absolute tile cap (bounds the lane-fold unroll / compile time).
_MAX_TILE = 32768


def _cdiv(a, b):
    return -(-a // b)


def _round_up(x, m):
    return _cdiv(x, m) * m


def _lane_fold(x):
    """Sum a (r, t) array over 128-lane chunks -> (r, 128).

    t must be a multiple of 128 (guaranteed by the wrapper's padding).  All slices are
    static and 128-aligned, so they map exactly onto vreg columns: the whole fold is
    pure VPU adds — no cross-lane (XLU) reduction and no scalar->vreg broadcasts.
    """
    t = x.shape[1]
    carry = None
    while t > 128:
        nc = t // 128
        if nc % 2:  # odd chunk count: peel the tail chunk into a 1-vreg carry
            tail = x[:, (nc - 1) * 128:]
            carry = tail if carry is None else carry + tail
            t = (nc - 1) * 128
            x = x[:, :t]
        half = t // 2
        x = x[:, :half] + x[:, half:]
        t = half
    return x if carry is None else x + carry


def _segmentor_kernel(feat_ref, w_ref, b_ref, gt_ref, logits_ref, part_ref):
    feat = feat_ref[...]          # (tile_n, Cin)  native layout, f32 or bf16
    w_t = w_ref[...]              # (6, Cin)       resident across the grid
    b = b_ref[...]                # (6, 1)         resident, f32

    # Backbone head: contract Cin of both operands -> (6, tile_n).  Same MXU pattern as
    # q @ k^T in attention; the output panel is lane-dense in points (unmasked stores).
    logits = lax.dot_general(
        w_t, feat,
        dimension_numbers=(((1,), (1,)), ((), ())),
        preferred_element_type=jnp.float32,
    ) + b                                                     # (6, tile_n) f32

    centroid = logits[0:3, :]                                 # (3, tile_n)
    towards_raw = logits[3:6, :]                              # (3, tile_n)
    cond = jnp.sum(towards_raw, axis=0, keepdims=True)        # (1, tile_n)
    # Flip only the 3 "towards" rows where the per-point channel sum is negative.
    towards = jnp.where(cond < 0.0, -towards_raw, towards_raw)

    # Two direct sub-stores (no sublane concatenate of the 6-row output panel).
    logits_ref[0:3, :] = centroid
    logits_ref[3:6, :] = towards

    gt = gt_ref[...]              # (7, tile_n) f32: rows 0-2 cgt, 3-5 tgt, 6 valid mask
    cgt = gt[0:3, :]
    tgt = gt[3:6, :]
    valid = gt[6:7, :]            # 1.0 for real points, 0.0 for zero-padded tail points

    d_c = jnp.abs(cgt - centroid) * valid                     # (3, tile_n)
    d_t = jnp.abs(tgt - towards) * valid                      # (3, tile_n)
    # Padded points carry cgt == 0, so the norm row is already 0 there (no mask needed).
    nrm = jnp.sqrt(jnp.sum(cgt * cgt, axis=0, keepdims=True))  # (1, tile_n)

    # Per-tile lane-partials: rows 0-2 |cgt-centroid|, row 3 ||cgt||, rows 4-6 |tgt-towards|.
    part_ref[0] = jnp.concatenate(
        [_lane_fold(d_c), _lane_fold(nrm), _lane_fold(d_t)], axis=0)   # (7, 128)


def _choose_tiling(n, requested_tile_n, c_in, feat_itemsize):
    """Pick (tile_n, num_tiles, n_pad); tile_n is a multiple of 128."""
    if requested_tile_n is not None:
        tile = int(requested_tile_n)
        if tile <= 0 or tile % 128 != 0:
            raise ValueError("tile_n must be a positive multiple of 128")
        num = _cdiv(n, tile)
        return tile, num, tile * num

    # Worst-case VMEM per point, double-buffered: feat minor dim lane-padded to 128,
    # (7,t) GT and (6,t) logits tiles padded to 8 sublanes (f32).
    feat_bpp = max(128, _round_up(c_in, 128)) * feat_itemsize
    per_point = 2 * (feat_bpp + 8 * 4 + 8 * 4)
    cap = min(_MAX_TILE, max(128, (_VMEM_BUDGET_BYTES // per_point) // 128 * 128))

    # Prefer >= 2 tiles so the "parallel" grid axis can shard across v7x's two
    # TensorCores (harmless on single-TC v5e/v6e).
    min_tiles = 2 if n >= 256 else 1
    num = max(min_tiles, _cdiv(n, cap))
    tile = _round_up(_cdiv(n, num), 128)
    return tile, num, tile * num


def pack_ground_truth(centroid_gt, towards_gt):
    """Build the channel-major (7, N) ground-truth stream consumed by the kernel.

    Call ONCE per sample at data-prep time (NOT in the training hot path): rows 0-2 are
    centroid_gt^T, rows 3-5 towards_gt^T, row 6 a valid-point mask (all ones; the
    wrapper zero-pads it when N is not tile-aligned).
    """
    n = centroid_gt.shape[0]
    return jnp.concatenate(
        [jnp.transpose(centroid_gt).astype(jnp.float32),
         jnp.transpose(towards_gt).astype(jnp.float32),
         jnp.ones((1, n), jnp.float32)],
        axis=0)


@functools.partial(jax.jit, static_argnames=("tile_n",))
def default_segmentor_forward(feat, w, b, gt_cm, *, tile_n=None):
    """Fused backbone-head + criteria forward pass.

    feat : (N, Cin) point features, f32 or bf16 (bf16 halves the dominant HBM stream).
    w, b : (Cin, 6) and (1, 6)/(6,) linear-head parameters.
    gt_cm: (7, N) channel-major ground truth from pack_ground_truth().
    Returns (loss, logits_cm) with logits_cm of shape (6, N) (channel-major: rows 0-2
    centroid, rows 3-5 towards) — the downstream consumer takes channel-major logits,
    avoiding a full (N, 6) HBM re-write of the output.
    """
    n, c_in = feat.shape
    assert gt_cm.shape == (7, n), gt_cm.shape

    tile, num_tiles, n_pad = _choose_tiling(n, tile_n, c_in, feat.dtype.itemsize)

    if n_pad != n:
        # Unaligned point count: zero-pad to the tile grid (extra copy only on this
        # fallback path).  Padded points have valid-mask 0 -> excluded from the loss.
        feat = jnp.pad(feat, ((0, n_pad - n), (0, 0)))
        gt_cm = jnp.pad(gt_cm, ((0, 0), (0, n_pad - n)))

    w_t = jnp.transpose(w).astype(feat.dtype)          # (6, Cin)  tiny
    b_col = jnp.reshape(b, (6, 1)).astype(jnp.float32)  # (6, 1)

    logits_cm, partials = pl.pallas_call(
        _segmentor_kernel,
        out_shape=(
            jax.ShapeDtypeStruct((6, n_pad), jnp.float32),            # logits (channel-major)
            jax.ShapeDtypeStruct((num_tiles, 7, 128), jnp.float32),   # per-tile lane-partials
        ),
        grid_spec=pltpu.PrefetchScalarGridSpec(
            num_scalar_prefetch=0,
            grid=(num_tiles,),
            in_specs=[
                pl.BlockSpec((tile, c_in), lambda i: (i, 0)),   # feat, native (N, Cin) layout
                pl.BlockSpec((6, c_in), lambda i: (0, 0)),      # W^T (resident)
                pl.BlockSpec((6, 1), lambda i: (0, 0)),         # b   (resident)
                pl.BlockSpec((7, tile), lambda i: (0, i)),      # packed GT + valid mask
            ],
            out_specs=[
                pl.BlockSpec((6, tile), lambda i: (0, i)),      # logits (lane-dense store)
                pl.BlockSpec((1, 7, 128), lambda i: (i, 0, 0)),  # this tile's partial slab
            ],
        ),
        compiler_params=pltpu.CompilerParams(
            # Tiles are fully independent (private partial slabs) -> safe to shard
            # across the two TensorCores on v7x; harmless on single-TC v5e/v6e.
            dimension_semantics=("parallel",),
            vmem_limit_bytes=_VMEM_LIMIT_BYTES,
        ),
    )(feat, w_t, b_col, gt_cm)

    # Tiny cross-tile reduction + loss arithmetic (7 * 128 * num_tiles floats).
    sums = jnp.sum(partials, axis=(0, 2))               # (7,)
    n_f = jnp.float32(n)                                 # true (unpadded) point count
    s_cdiff = sums[0] + sums[1] + sums[2]                # sum |cgt - centroid|
    s_cnorm = sums[3]                                    # sum ||cgt||_2
    s_tdiff = sums[4] + sums[5] + sums[6]                # sum |tgt - towards|
    centroid_loss = (s_cdiff / (3.0 * n_f)) / (s_cnorm / n_f + 1e-6)
    towards_loss = s_tdiff / (3.0 * n_f)
    loss = centroid_loss + towards_loss

    if n_pad != n:
        logits_cm = logits_cm[:, :n]
    return loss, logits_cm


def _reference(feat, w, b, centroid_gt, towards_gt):
    logits = feat @ w + jnp.reshape(b, (1, 6))
    centroid = logits[:, :3]
    towards = logits[:, 3:]
    cond = jnp.sum(towards, axis=1)
    towards = jnp.where(cond[:, None] < 0, -towards, towards)
    logits = jnp.concatenate([centroid, towards], axis=1)
    centroid_loss = jnp.mean(jnp.abs(centroid_gt - centroid))
    centroid_loss = centroid_loss / jnp.mean(
        jnp.linalg.norm(centroid_gt, axis=1) + 1e-6)
    towards_loss = jnp.mean(jnp.abs(towards_gt - towards))
    return centroid_loss + towards_loss, logits


if __name__ == "__main__":
    N, C_IN = 512, 16  # small point cloud: 512 points, 16 input channels

    key = jax.random.PRNGKey(0)
    k_feat, k_w, k_b, k_cgt, k_tgt = jax.random.split(key, 5)

    feat = jax.random.normal(k_feat, (N, C_IN), dtype=jnp.float32)
    w = jax.random.normal(k_w, (C_IN, 6), dtype=jnp.float32) * 0.1
    b = jax.random.normal(k_b, (1, 6), dtype=jnp.float32) * 0.01
    centroid_gt = jax.random.normal(k_cgt, (N, 3), dtype=jnp.float32)
    towards_gt = jax.random.normal(k_tgt, (N, 3), dtype=jnp.float32)

    # Data-prep time (once per sample): channel-major GT stream.
    gt_cm = pack_ground_truth(centroid_gt, towards_gt)

    ref_loss, ref_logits = _reference(feat, w, b, centroid_gt, towards_gt)

    # Auto tiling: 2 x 256-point tiles -> exercises the parallel grid / v7x 2-TC path.
    loss, logits_cm = default_segmentor_forward(feat, w, b, gt_cm)
    jax.block_until_ready((loss, logits_cm))
    assert logits_cm.shape == (6, N)
    assert jnp.allclose(loss, ref_loss, atol=1e-4, rtol=1e-4), (loss, ref_loss)
    assert jnp.allclose(logits_cm, ref_logits.T, atol=1e-4, rtol=1e-4)

    # Explicit small tiles (4 x 128) -> exercises the multi-tile partial reduction.
    loss2, logits_cm2 = default_segmentor_forward(feat, w, b, gt_cm, tile_n=128)
    jax.block_until_ready((loss2, logits_cm2))
    assert jnp.allclose(loss2, ref_loss, atol=1e-4, rtol=1e-4), (loss2, ref_loss)
    assert jnp.allclose(logits_cm2, ref_logits.T, atol=1e-4, rtol=1e-4)

    # bf16 feature stream (halves the dominant HBM read; f32 accumulation in-kernel).
    feat_bf16 = feat.astype(jnp.bfloat16)
    ref_loss_bf, ref_logits_bf = _reference(
        feat_bf16.astype(jnp.float32),
        w.astype(jnp.bfloat16).astype(jnp.float32), b, centroid_gt, towards_gt)
    loss3, logits_cm3 = default_segmentor_forward(feat_bf16, w, b, gt_cm)
    jax.block_until_ready((loss3, logits_cm3))
    assert jnp.allclose(loss3, ref_loss_bf, atol=1e-2, rtol=1e-2), (loss3, ref_loss_bf)
    assert jnp.allclose(logits_cm3, ref_logits_bf.T, atol=1e-2, rtol=1e-2)

    # Non-128-aligned point count -> zero-padded, mask-excluded tail.
    N2 = 500
    feat_u = feat[:N2]
    cgt_u, tgt_u = centroid_gt[:N2], towards_gt[:N2]
    gt_cm_u = pack_ground_truth(cgt_u, tgt_u)
    ref_loss_u, ref_logits_u = _reference(feat_u, w, b, cgt_u, tgt_u)
    loss4, logits_cm4 = default_segmentor_forward(feat_u, w, b, gt_cm_u)
    jax.block_until_ready((loss4, logits_cm4))
    assert logits_cm4.shape == (6, N2)
    assert jnp.allclose(loss4, ref_loss_u, atol=1e-4, rtol=1e-4), (loss4, ref_loss_u)
    assert jnp.allclose(logits_cm4, ref_logits_u.T, atol=1e-4, rtol=1e-4)

    print("KERNEL_OK")
</pallas_src>

<mosaic_0001>
module attributes {stable_mosaic.version = 11 : i64} {
  func.func @_segmentor_kernel(%arg0: i32, %arg1: memref<256x16xf32, #tpu.memory_space<vmem>>, %arg2: memref<6x16xf32, #tpu.memory_space<vmem>>, %arg3: memref<6x1xf32, #tpu.memory_space<vmem>>, %arg4: memref<7x256xf32, #tpu.memory_space<vmem>>, %arg5: memref<6x256xf32, #tpu.memory_space<vmem>>, %arg6: memref<1x7x128xf32, #tpu.memory_space<vmem>>) attributes {dimension_semantics = [#tpu.dimension_semantics<parallel>], iteration_bounds = array<i64: 2>, scalar_prefetch = 0 : i64, scratch_operands = 0 : i64, tpu.core_type = #tpu.core_type<tc>, window_params = [{transform_indices = @transform_0, window_bounds = array<i64: 256, 16>}, {pipeline_mode = #tpu.pipeline_mode<synchronous>, transform_indices = @transform_1, window_bounds = array<i64: 6, 16>}, {pipeline_mode = #tpu.pipeline_mode<synchronous>, transform_indices = @transform_2, window_bounds = array<i64: 6, 1>}, {transform_indices = @transform_3, window_bounds = array<i64: 7, 256>}, {transform_indices = @transform_4, window_bounds = array<i64: 6, 256>}, {transform_indices = @transform_5, window_bounds = array<i64: 1, 7, 128>}]} {
    %c0 = arith.constant 0 : index
    %c0_0 = arith.constant 0 : index
    %0 = vector.load %arg1[%c0, %c0_0] : memref<256x16xf32, #tpu.memory_space<vmem>>, vector<256x16xf32>
    %c0_1 = arith.constant 0 : index
    %c0_2 = arith.constant 0 : index
    %1 = vector.load %arg2[%c0_1, %c0_2] : memref<6x16xf32, #tpu.memory_space<vmem>>, vector<6x16xf32>
    %c0_3 = arith.constant 0 : index
    %c0_4 = arith.constant 0 : index
    %2 = vector.load %arg3[%c0_3, %c0_4] : memref<6x1xf32, #tpu.memory_space<vmem>>, vector<6x1xf32>
    %cst = arith.constant dense<0.000000e+00> : vector<6x256xf32>
    %3 = tpu.matmul %1, %0, %cst {dimension_numbers = #tpu.dot_dimension_numbers<[1], [1], [0], [0], [0, 0, 1, 0], [], []>} : vector<6x16xf32>, vector<256x16xf32>, vector<6x256xf32> -> vector<6x256xf32>
    %4 = vector.broadcast %2 : vector<6x1xf32> to vector<6x256xf32>
    %5 = arith.addf %3, %4 : vector<6x256xf32>
    %6 = vector.extract_strided_slice %5 {offsets = [0, 0], sizes = [3, 256], strides = [1, 1]} : vector<6x256xf32> to vector<3x256xf32>
    %7 = vector.extract_strided_slice %5 {offsets = [3, 0], sizes = [3, 256], strides = [1, 1]} : vector<6x256xf32> to vector<3x256xf32>
    %cst_5 = arith.constant dense<0.000000e+00> : vector<256xf32>
    %8 = vector.multi_reduction <add>, %7, %cst_5 [0] : vector<3x256xf32> to vector<256xf32>
    %9 = vector.shape_cast %8 : vector<256xf32> to vector<1x256xf32>
    %cst_6 = arith.constant 0.000000e+00 : f32
    %10 = vector.broadcast %cst_6 : f32 to vector<1x256xf32>
    %11 = arith.cmpf olt, %9, %10 : vector<1x256xf32>
    %cst_7 = arith.constant 0.000000e+00 : f32
    %12 = vector.broadcast %cst_7 : f32 to vector<3x256xf32>
    %13 = arith.subf %12, %7 : vector<3x256xf32>
    %14 = vector.shape_cast %11 : vector<1x256xi1> to vector<1x256xi1>
    %15 = vector.broadcast %14 : vector<1x256xi1> to vector<3x256xi1>
    %16 = arith.select %15, %13, %7 : vector<3x256xi1>, vector<3x256xf32>
    %c0_8 = arith.constant 0 : index
    %c0_9 = arith.constant 0 : index
    %17 = vector.load %arg5[%c0_8, %c0_9] : memref<6x256xf32, #tpu.memory_space<vmem>>, vector<3x256xf32>
    tpu.vector_store %arg5[%c0_8, %c0_9], %6 {strides = array<i32>} : memref<6x256xf32, #tpu.memory_space<vmem>>, vector<3x256xf32>,
    %c3 = arith.constant 3 : index
    %c0_10 = arith.constant 0 : index
    %18 = vector.load %arg5[%c3, %c0_10] : memref<6x256xf32, #tpu.memory_space<vmem>>, vector<3x256xf32>
    tpu.vector_store %arg5[%c3, %c0_10], %16 {strides = array<i32>} : memref<6x256xf32, #tpu.memory_space<vmem>>, vector<3x256xf32>,
    %c0_11 = arith.constant 0 : index
    %c0_12 = arith.constant 0 : index
    %19 = vector.load %arg4[%c0_11, %c0_12] : memref<7x256xf32, #tpu.memory_space<vmem>>, vector<7x256xf32>
    %20 = vector.extract_strided_slice %19 {offsets = [0, 0], sizes = [3, 256], strides = [1, 1]} : vector<7x256xf32> to vector<3x256xf32>
    %21 = vector.extract_strided_slice %19 {offsets = [3, 0], sizes = [3, 256], strides = [1, 1]} : vector<7x256xf32> to vector<3x256xf32>
    %22 = vector.extract_strided_slice %19 {offsets = [6, 0], sizes = [1, 256], strides = [1, 1]} : vector<7x256xf32> to vector<1x256xf32>
    %23 = arith.subf %20, %6 : vector<3x256xf32>
    %24 = math.absf %23 : vector<3x256xf32>
    %25 = vector.broadcast %22 : vector<1x256xf32> to vector<3x256xf32>
    %26 = arith.mulf %24, %25 : vector<3x256xf32>
    %27 = arith.subf %21, %16 : vector<3x256xf32>
    %28 = math.absf %27 : vector<3x256xf32>
    %29 = vector.broadcast %22 : vector<1x256xf32> to vector<3x256xf32>
    %30 = arith.mulf %28, %29 : vector<3x256xf32>
    %31 = arith.mulf %20, %20 : vector<3x256xf32>
    %cst_13 = arith.constant dense<0.000000e+00> : vector<256xf32>
    %32 = vector.multi_reduction <add>, %31, %cst_13 [0] : vector<3x256xf32> to vector<256xf32>
    %33 = vector.shape_cast %32 : vector<256xf32> to vector<1x256xf32>
    %34 = math.sqrt %33 : vector<1x256xf32>
    %35 = vector.extract_strided_slice %26 {offsets = [0, 0], sizes = [3, 128], strides = [1, 1]} : vector<3x256xf32> to vector<3x128xf32>
    %36 = vector.extract_strided_slice %26 {offsets = [0, 128], sizes = [3, 128], strides = [1, 1]} : vector<3x256xf32> to vector<3x128xf32>
    %37 = arith.addf %35, %36 : vector<3x128xf32>
    %38 = vector.extract_strided_slice %34 {offsets = [0, 0], sizes = [1, 128], strides = [1, 1]} : vector<1x256xf32> to vector<1x128xf32>
    %39 = vector.extract_strided_slice %34 {offsets = [0, 128], sizes = [1, 128], strides = [1, 1]} : vector<1x256xf32> to vector<1x128xf32>
    %40 = arith.addf %38, %39 : vector<1x128xf32>
    %41 = vector.extract_strided_slice %30 {offsets = [0, 0], sizes = [3, 128], strides = [1, 1]} : vector<3x256xf32> to vector<3x128xf32>
    %42 = vector.extract_strided_slice %30 {offsets = [0, 128], sizes = [3, 128], strides = [1, 1]} : vector<3x256xf32> to vector<3x128xf32>
    %43 = arith.addf %41, %42 : vector<3x128xf32>
    %44 = tpu.concatenate %37, %40, %43 in 0 : vector<3x128xf32>, vector<1x128xf32>, vector<3x128xf32> -> vector<7x128xf32>
    %c0_14 = arith.constant 0 : index
    %c0_15 = arith.constant 0 : index
    %c0_16 = arith.constant 0 : index
    %45 = vector.load %arg6[%c0_14, %c0_15, %c0_16] : memref<1x7x128xf32, #tpu.memory_space<vmem>>, vector<1x7x128xf32>
    %46 = vector.shape_cast %45 : vector<1x7x128xf32> to vector<7x128xf32>
    %47 = vector.shape_cast %44 : vector<7x128xf32> to vector<1x7x128xf32>
    tpu.vector_store %arg6[%c0_14, %c0_15, %c0_16], %47 {strides = array<i32>} : memref<1x7x128xf32, #tpu.memory_space<vmem>>, vector<1x7x128xf32>,
    return
  }
  func.func @transform_0(%arg0: i32) -> (i32, i32) {
    %c0_i32 = arith.constant 0 : i32
    %c0_i32_0 = arith.constant 0 : i32
    return %arg0, %c0_i32 : i32, i32
  }
  func.func @transform_1(%arg0: i32) -> (i32, i32) {
    %c0_i32 = arith.constant 0 : i32
    %c0_i32_0 = arith.constant 0 : i32
    %c0_i32_1 = arith.constant 0 : i32
    return %c0_i32, %c0_i32_0 : i32, i32
  }
  func.func @transform_2(%arg0: i32) -> (i32, i32) {
    %c0_i32 = arith.constant 0 : i32
    %c0_i32_0 = arith.constant 0 : i32
    %c0_i32_1 = arith.constant 0 : i32
    return %c0_i32, %c0_i32_0 : i32, i32
  }
  func.func @transform_3(%arg0: i32) -> (i32, i32) {
    %c0_i32 = arith.constant 0 : i32
    %c0_i32_0 = arith.constant 0 : i32
    return %c0_i32, %arg0 : i32, i32
  }
  func.func @transform_4(%arg0: i32) -> (i32, i32) {
    %c0_i32 = arith.constant 0 : i32
    %c0_i32_0 = arith.constant 0 : i32
    return %c0_i32, %arg0 : i32, i32
  }
  func.func @transform_5(%arg0: i32) -> (i32, i32, i32) {
    %c0_i32 = arith.constant 0 : i32
    %c0_i32_0 = arith.constant 0 : i32
    %c0_i32_1 = arith.constant 0 : i32
    return %arg0, %c0_i32, %c0_i32_0 : i32, i32, i32
  }
}

</mosaic_0001>

<bundles_post_ra>
// kernel: default_segmentor_forward.1
= control target key start
LH: loop header
LB: loop body
LE: loop exit
PB: predicated region body
PF: predicated region fallthrough
CT: control target
= control target key end

     0   :  { %11 = vsyncpa [#allocation3], 0  ;;  %s1213_s0 = inlined_call_operand.vmem [shape: f32[512,16], index: 0, kind: input, shape index: {}]   ;;  %s1214_s1 = inlined_call_operand.vmem [shape: f32[6,16], index: 1, kind: input, shape index: {}]   ;;  %s1215_s2 = inlined_call_operand.vmem [shape: f32[6,1], index: 2, kind: input, shape index: {}]   ;;  %s1216_s3 = inlined_call_operand.vmem [shape: f32[7,512], index: 3, kind: input, shape index: {}]   ;;  %s1217_s4 = inlined_call_operand.hbm [shape: f32[6,512], index: 4, kind: output, shape index: {0}]   ;;  %s1218_s5 = inlined_call_operand.vmem [shape: f32[2,7,128], index: 5, kind: output, shape index: {1}]  }
   0x1   :  { %13 = vsyncpa [#allocation3 + $0x1], 0  ;;  %s955_s18 = smov 0   ;;  %s957_s19 = smov 0  }
   0x2   :  { %s959_s20 = smov 0   ;;  %s961_s21 = smov 0  }
   0x3 LB: > { %s976_s22 = sadd.s32 4294967295, %s921_s21   ;;  %s683_s23 = sadd.s32 4294967294, %s921_s21   ;;  %s921_s21 = sphi %s961_s21, %s1226_s21   ;;  %s917_s20 = sphi %s959_s20, %s1225_s20   ;;  %s913_s19 = sphi %s957_s19, %s1224_s19   ;;  %s909_s18 = sphi %s955_s18, %s1223_s18  }
   0x4   : > { %s980_s24 = sadd.s32 1, %s921_s21   ;;  %s120_s25 = sadd.s32 1, %s917_s20 }
   0x5   : > { %s117_s26 = ssub.s32 %s921_s21, %s980_s24  ;;  %p130_p0 = scmp.ne.s32.totalorder %s917_s20, %s913_s19 }
   0x6   : > { %p118_p1 = scmp.eq.s32.totalorder %s117_s26, 0  ;;  %p131_p2 = scmp.eq.s32.totalorder %s976_s22, 1 }
   0x7   : > { %p136_p3 = scmp.ne.s32.totalorder %s913_s19, %s909_s18  ;;  %p137_p4 = scmp.eq.s32.totalorder %s683_s23, 1 }
   0x8   : > { %s991_s27 = scalar_select %p118_p1, %s917_s20, %s120_s25  }
   0x9   : > { %p993_p5 = por %p131_p2, %p130_p0  ;;  %p997_p6 = por %p137_p4, %p136_p3 }
   0xa   : > { %p686_p7 = scmp.ge.s32.totalorder %s921_s21, 1  ;;  %p205_p8 = scmp.lt.s32.totalorder %s921_s21, 3 }
   0xc   : > { %p206_p9 = pnand %p686_p7, %p205_p8 }
   0xd   : > { %s688_s30 = sshll.u32 (!%p206_p9), %s976_s22, 5  ;;  %vm298_vm0 = vcmask (!%p206_p9), 130048   ;;  %v1007_v0 = vld [vmem:[%s1214_s1] sm:$0x3f] (!%p206_p9)  ;;  %v923_v1 = vmov (!%p206_p9), 0   ;;  %s690_s14 = sshll.u32 (!%p206_p9), %s976_s22, 1 }
   0xe   : > { %209 = sbr.rel (%p206_p9) target bundleno = 347 (0x15b), region = 36  ;;  %p243_p10 = scmp.lt.s32.totalorder (!%p206_p9), %s688_s30, 63  ;;  %764 = vmatprep.mubr.msk.f32.mxu0 (!%p206_p9), %vm298_vm0, %v1007_v0  ;;  %854 = vset.pattern.permute.xlu0 (!%p206_p9), %v923_v1  ;;  %v292_v2 = vld [vmem:[%s1215_s2] sm:$0x3f] (!%p206_p9)  ;;  %vm1021_vm1 = vmpackc.low (!%p206_p9), %vm298_vm0, %vm298_vm0  ;;  %vm475_vm2 = vcmask (!%p206_p9), 1042432   ;;  %v510_v1 = vlaneseq (!%p206_p9) }
   0xf   : > { %295 = vperm.xlu0 (!%p206_p9), %854, %v292_v2   ;;  %p249_p11 = scmp.lt.s32.totalorder (!%p206_p9), %s690_s14, 3  ;;  %s233_s25 = sand.u32 (!%p206_p9), 1, %s913_s19  }
  0x10   : > { %s687_s26 = sshll.u32 (!%p206_p9), %s233_s25, 4  ;;  %s731_s6 = sshll.u32 (!%p206_p9), %s976_s22, 8 }
  0x11   : > { %p255_p12 = scmp.lt.s32.totalorder (!%p206_p9), %s976_s22, 1  ;;  %s567_s11 = scalar_lea.sflag (!%p206_p9), [#allocation3], %s233_s25 }
  0x15   : > { %s1228_s30 = smov (!%p243_p10, %s688_s30), 63  ;;  %s1230_s14 = smov (!%p249_p11, %s690_s14), 3 }
  0x16   : > { %s689_s10 = sshll.u32 %s1228_s30, 3  ;;  %s691_s15 = sshll.u32 %s1230_s14, 3 }
  0x17   : > { %s1017_s13 = scalar_lea.vmem %s1213_s0, %s689_s10  ;;  %s252_s23 = scalar_lea.vmem %s1216_s3, %s691_s15 }
  0x18   : > { %v275_v4 = vld [vmem:[%s1017_s13 + $0x80] sm:$0xff]  ;;  %v276_v5 = vld [vmem:[%s1017_s13 + $0x88] sm:$0xff]  ;;  %v277_v9 = vld [vmem:[%s1017_s13 + $0x90] sm:$0xff]  ;;  %s1118_s30 = scalar_lea.vmem [#allocation2], %s687_s26  ;;  %s1146_s10 = scalar_lea.hbm %s1217_s4, %s731_s6 }
  0x19   : > { %v259_v6 = vld [vmem:[%s1017_s13] sm:$0xff]  ;;  %v766_v7 = vpack.c.bf16 %v276_v5, %v275_v4  ;;  %v260_v8 = vld [vmem:[%s1017_s13 + $0x8] sm:$0xff]  ;;  %v278_v10 = vld [vmem:[%s1017_s13 + $0x98] sm:$0xff]  ;;  %v511_v4 = vshrl.u32 %v510_v1, 7  ;;  %s585_s7 = sshll.u32 %s1118_s30, 4  ;;  %s1232_s22 = smov (!%p255_p12, %s976_s22), 1  ;;  %s1148_s7 = int_to_ptr.vmem [resolvable:$true] %s585_s7 }
  0x1a   : > { %v769_v11 = vpack.c.bf16 %v260_v8, %v259_v6  ;;  %v772_v12 = vpack.c.bf16 %v278_v10, %v277_v9  ;;  %v261_v13 = vld [vmem:[%s1017_s13 + $0x10] sm:$0xff]  ;;  %v262_v14 = vld [vmem:[%s1017_s13 + $0x18] sm:$0xff]  ;;  %v279_v15 = vld [vmem:[%s1017_s13 + $0xa0] sm:$0xff]  ;;  %s859_s12 = scalar_lea.vmem %s1148_s7, 256 }
  0x1b   : > { %768 = vmatprep.subr.msk.bf16.mxu0 %vm1021_vm1, %v766_v7  ;;  %v280_v16 = vld [vmem:[%s1017_s13 + $0xa8] sm:$0xff]  ;;  %v775_v17 = vpack.c.bf16 %v262_v14, %v261_v13  ;;  %v263_v19 = vld [vmem:[%s1017_s13 + $0x20] sm:$0xff]  ;;  %v281_v21 = vld [vmem:[%s1017_s13 + $0xb0] sm:$0xff]  ;;  %v512_v8 = vsub.s32 6, %v511_v4  ;;  %p860_p13 = scmp.ne.s32.totalorder %s1148_s7, %s859_s12 }
  0x1c   : > { %771 = vmatpush3.bf16.xpose.msk.msra.mxu0 %vm1021_vm1, %v769_v11  ;;  %v778_v18 = vpack.c.bf16 %v280_v16, %v279_v15  ;;  %v264_v20 = vld [vmem:[%s1017_s13 + $0x28] sm:$0xff]  ;;  %v282_v22 = vld [vmem:[%s1017_s13 + $0xb8] sm:$0xff]  ;;  %v265_v25 = vld [vmem:[%s1017_s13 + $0x30] sm:$0xff] }
  0x1d   : > { %774 = vmatprep.subr.msk.bf16.mxu0 %vm1021_vm1, %v772_v12  ;;  %v781_v23 = vpack.c.bf16 %v264_v20, %v263_v19  ;;  %v784_v24 = vpack.c.bf16 %v282_v22, %v281_v21  ;;  %v266_v26 = vld [vmem:[%s1017_s13 + $0x38] sm:$0xff]  ;;  %v283_v27 = vld [vmem:[%s1017_s13 + $0xc0] sm:$0xff]  ;;  %v284_v28 = vld [vmem:[%s1017_s13 + $0xc8] sm:$0xff]  ;;  %p861_p0 = pnand %p860_p13, %p993_p5 }
  0x1e   : > { %v787_v29 = vpack.c.bf16 %v266_v26, %v265_v25  ;;  %v790_v30 = vpack.c.bf16 %v284_v28, %v283_v27  ;;  %v267_v31 = vld [vmem:[%s1017_s13 + $0x40] sm:$0xff]  ;;  %v268_v32 = vld [vmem:[%s1017_s13 + $0x48] sm:$0xff]  ;;  %v285_v33 = vld [vmem:[%s1017_s13 + $0xd0] sm:$0xff] }
  0x1f   : > { %v286_v34 = vld [vmem:[%s1017_s13 + $0xd8] sm:$0xff]  ;;  %v793_v35 = vpack.c.bf16 %v268_v32, %v267_v31  ;;  %v269_v37 = vld [vmem:[%s1017_s13 + $0x50] sm:$0xff]  ;;  %v287_v39 = vld [vmem:[%s1017_s13 + $0xe0] sm:$0xff]  ;;  %p862_p1 = pneg %p861_p0 }
  0x20   : > { %v796_v36 = vpack.c.bf16 %v286_v34, %v285_v33  ;;  %v270_v38 = vld [vmem:[%s1017_s13 + $0x58] sm:$0xff]  ;;  %v288_v40 = vld [vmem:[%s1017_s13 + $0xe8] sm:$0xff]  ;;  %v271_v43 = vld [vmem:[%s1017_s13 + $0x60] sm:$0xff] }
  0x21   : > { %v799_v41 = vpack.c.bf16 %v270_v38, %v269_v37  ;;  %v802_v42 = vpack.c.bf16 %v288_v40, %v287_v39  ;;  %v272_v44 = vld [vmem:[%s1017_s13 + $0x68] sm:$0xff]  ;;  %v289_v45 = vld [vmem:[%s1017_s13 + $0xf0] sm:$0xff]  ;;  %v290_v46 = vld [vmem:[%s1017_s13 + $0xf8] sm:$0xff] }
  0x22   : > { %v805_v47 = vpack.c.bf16 %v272_v44, %v271_v43  ;;  %v808_v48 = vpack.c.bf16 %v290_v46, %v289_v45  ;;  %v273_v49 = vld [vmem:[%s1017_s13 + $0x70] sm:$0xff]  ;;  %v274_v50 = vld [vmem:[%s1017_s13 + $0x78] sm:$0xff]  ;;  %v1095_v52 = vld [vmem:[%s252_s23] sm:$0x7f]  ;;  %s924_s13 = smov [#allocation2]  }
  0x23   : > { %v811_v51 = vpack.c.bf16 %v274_v50, %v273_v49  ;;  %v1097_v53 = vld [vmem:[%s252_s23 + $0x8] sm:$0x7f]  ;;  %v526_v54 = vmul.f32 %v1095_v52, %v1095_v52  ;;  %v1115_v16 = vrot.slane %v1095_v52, %v512_v8  ;;  %s863_s14 = sshll.u32 %s924_s13, 4  ;;  %s864_s14 = int_to_ptr.vmem [resolvable:$false] %s863_s14 }
  0x24   : > { %777 = vmatpush3.bf16.xpose.msk.msra.mxu0 %vm1021_vm1, %v775_v17  ;;  %v527_v55 = vmul.f32 %v1097_v53, %v1097_v53  ;;  %v1123_v19 = vrot.slane %v1097_v53, %v512_v8  ;;  %s865_s15 = scalar_lea.vmem %s864_s14, 512  ;;  %p866_p2 = scmp.lt.s32.totalorder %s1148_s7, %s864_s14 }
  0x25   : > { %780 = vmatprep.subr.msk.bf16.mxu0 %vm1021_vm1, %v778_v18  ;;  %v528_v56 = vsel %vm475_vm2, %v526_v54, 0.0  ;;  %p867_p3 = scmp.lt.s32.totalorder %s865_s15, %s859_s12 }
  0x26   : > { %v535_v57 = vsel %vm475_vm2, %v527_v55, 0.0  ;;  %v529_v58 = vrot.slane %v528_v56, 4 }
  0x27   : > { %v536_v59 = vrot.slane %v535_v57, 4  ;;  %p868_p4 = por %p867_p3, %p866_p2 }
  0x28   : > { %v530_v60 = vadd.f32 %v529_v58, %v528_v56 }
  0x29   : > { %v537_v61 = vadd.f32 %v536_v59, %v535_v57  ;;  %p869_p7 = pnand %p868_p4, %p862_p1 }
  0x2a   : > { %v531_v62 = vrot.slane %v530_v60, 2 }
  0x2b   : > { %v538_v63 = vrot.slane %v537_v61, 2 }
  0x2c   : > { %783 = vmatpush3.bf16.xpose.msk.msra.mxu0 %vm1021_vm1, %v781_v23 }
  0x2d   : > { %786 = vmatprep.subr.msk.bf16.mxu0 %vm1021_vm1, %v784_v24  ;;  %v539_v2 = vadd.f32 %v538_v63, %v537_v61 }
  0x2f   : > { %v540_v5 = vrot.slane %v539_v2, 1 }
  0x31   : > { %v1110_v9 = vadd.f32 %v540_v5, %v539_v2 }
  0x33   : > { %vm551_vm4 = vcmp.eq.f32.partialorder %v1110_v9, inf  ;;  %vm553_vm8 = vcmp.eq.f32.partialorder %v1110_v9, 0.0 }
  0x34   : > { %789 = vmatpush3.bf16.xpose.msk.msra.mxu0 %vm1021_vm1, %v787_v29 }
  0x35   : > { %792 = vmatprep.subr.msk.bf16.mxu0 %vm1021_vm1, %v790_v30 }
  0x3c   : > { %795 = vmatpush3.bf16.xpose.msk.msra.mxu0 %vm1021_vm1, %v793_v35 }
  0x3d   : > { %798 = vmatprep.subr.msk.bf16.mxu0 %vm1021_vm1, %v796_v36 }
  0x44   : > { %801 = vmatpush3.bf16.xpose.msk.msra.mxu0 %vm1021_vm1, %v799_v41 }
  0x45   : > { %804 = vmatprep.subr.msk.bf16.mxu0 %vm1021_vm1, %v802_v42 }
  0x4c   : > { %807 = vmatpush3.bf16.xpose.msk.msra.mxu0 %vm1021_vm1, %v805_v47  ;;  %v554_v47 = vand.u32 2147483648, %v1110_v9 }
  0x4d   : > { %810 = vmatprep.subr.msk.bf16.mxu0 %vm1021_vm1, %v808_v48 }
  0x54   : > { %813 = vmatpush3.bf16.xpose.msk.msra.mxu0 %vm1021_vm1, %v811_v51 }
  0x5b   : > { %765 = vmatmul.mubr.msk.f32.vlgmr.msra.gmra.mrb[0].mxu0 %vm298_vm0, %v1007_v0  ;;  %v532_v0 = vadd.f32 %v531_v62, %v530_v60 }
  0x5d   : > { %v533_v3 = vrot.slane %v532_v0, 1 }
  0x5f   : > { %v1106_v6 = vadd.f32 %v533_v3, %v532_v0 }
  0x61   : > { %855 = vrsqrt.f32 %v1106_v6  ;;  %vm544_vm3 = vcmp.eq.f32.partialorder %v1106_v6, inf  ;;  %v547_v46 = vand.u32 2147483648, %v1106_v6  ;;  %vm546_vm6 = vcmp.eq.f32.partialorder %v1106_v6, 0.0 }
  0x62   : > { %857 = vrsqrt.f32 %v1110_v9 }
  0x6b   : > { %v856_v32 = vpop.eup %855 }
  0x6c   : > { %v858_v35 = vpop.eup %857  ;;  %v543_v37 = vmul.f32 %v856_v32, %v1106_v6 }
  0x6d   : > { %v550_v40 = vmul.f32 %v858_v35, %v1110_v9 }
  0x6e   : > { %v545_v45 = vsel %vm544_vm3, %v1106_v6, %v543_v37 }
  0x6f   : > { %v552_v49 = vsel %vm551_vm4, %v1110_v9, %v550_v40 }
  0x8e   : > { %v296_v7 = vpop.permute.xlu0 %295 }
 0x12e   : > { %v464_v10 = vpop.f32.mrb[0].mxu0 }
 0x12f   : > { %v465_v11 = vadd.f32 %v464_v10, %v296_v7  ;;  %v466_v12 = vpop.f32.mrb[1].mxu0 }
 0x130   : > { %v467_v13 = vadd.f32 %v466_v12, %v296_v7 }
 0x131   : > { %v471_v14 = vrot.slane %v465_v11, 3  ;;  %v506_v15 = vsub.f32 %v1095_v52, %v465_v11  ;;  %500 = vst [vmem:[%s1118_s30] sm:$0x7] %v465_v11  ;;  %v492_v42 = vsub.f32 0.0, %v465_v11 }
 0x132   : > { %v472_v17 = vrot.slane %v467_v13, 3  ;;  %v507_v18 = vsub.f32 %v1097_v53, %v467_v13  ;;  %501 = vst [vmem:[%s1118_s30 + $0x8] sm:$0x7] %v467_v13  ;;  %v493_v44 = vsub.f32 0.0, %v467_v13 }
 0x133   : > { %v476_v20 = vsel %vm475_vm2, %v471_v14, 0.0  ;;  %v508_v21 = vand.u32 2147483647, %v506_v15 }
 0x134   : > { %v477_v22 = vrot.slane %v476_v20, 4  ;;  %v483_v23 = vsel %vm475_vm2, %v472_v17, 0.0  ;;  %v509_v24 = vand.u32 2147483647, %v507_v18 }
 0x135   : > { %v518_v25 = vmul.f32 %v1115_v16, %v508_v21  ;;  %v484_v26 = vrot.slane %v483_v23, 4 }
 0x136   : > { %v478_v27 = vadd.f32 %v477_v22, %v476_v20  ;;  %v519_v28 = vmul.f32 %v1123_v19, %v509_v24 }
 0x137   : > { %v485_v29 = vadd.f32 %v484_v26, %v483_v23 }
 0x138   : > { %v479_v30 = vrot.slane %v478_v27, 2  ;;  %v1130_v31 = vadd.f32 %v519_v28, %v518_v25 }
 0x139   : > { %v486_v33 = vrot.slane %v485_v29, 2 }
 0x13a   : > { %v480_v34 = vadd.f32 %v479_v30, %v478_v27 }
 0x13b   : > { %v487_v36 = vadd.f32 %v486_v33, %v485_v29 }
 0x13c   : > { %v481_v38 = vrot.slane %v480_v34, 1 }
 0x13d   : > { %v488_v39 = vrot.slane %v487_v36, 1 }
 0x13e   : > { %v482_v41 = vadd.f32 %v481_v38, %v480_v34 }
 0x13f   : > { %v489_v43 = vadd.f32 %v488_v39, %v487_v36 }
 0x140   : > { %vm490_vm5 = vcmp.lt.f32.partialorder %v482_v41, 0.0 }
 0x141   : > { %vm491_vm7 = vcmp.lt.f32.partialorder %v489_v43, 0.0  ;;  %v498_v48 = vsel %vm490_vm5, %v492_v42, %v465_v11 }
 0x142   : > { %v499_v50 = vsel %vm491_vm7, %v493_v44, %v467_v13  ;;  %502 = vst [vmem:[%s1118_s30] sm:$0x38] %v498_v48  ;;  %v520_v51 = vsub.f32 %v1095_v52, %v498_v48 }
 0x143   : > { %503 = vst [vmem:[%s1118_s30 + $0x8] sm:$0x38] %v499_v50  ;;  %v521_v54 = vsub.f32 %v1097_v53, %v499_v50 }
 0x144   : > { %v522_v55 = vand.u32 2147483647, %v520_v51 }
 0x145   : > { %872 = shalt.err (!%p869_p7)
}
 0x146   : > { %s873_s16 = scalar_lea.hbm %s1146_s10, 256  ;;  %s877_s25 = scalar_lea.hbm %s1217_s4, 512 }
 0x147   : > { %p874_p8 = scmp.ne.s32.totalorder %s1146_s10, %s873_s16  ;;  %p878_p11 = scmp.lt.u32.totalorder %s1146_s10, %s1217_s4 }
 0x148   : > { %p879_p12 = scmp.lt.u32.totalorder %s877_s25, %s873_s16  ;;  %p881_p0 = scmp.lt.u32.totalorder %s873_s16, %s1146_s10 }
 0x149   : > { %p875_p9 = pnand %p874_p8, %p993_p5 }
 0x14a   : > { %p880_p13 = por %p879_p12, %p878_p11 }
 0x14b   : > { %p876_p10 = pneg %p875_p9 }
 0x14c   : > { %p882_p1 = por %p881_p0, %p880_p13 }
 0x14e   : > { %p883_p2 = pnand %p882_p1, %p876_p10 }
 0x150   : > { %886 = shalt.err (!%p883_p2)
}
 0x151   : > { %814 = dma.vmem_to_hbm [thread:$0]  (%p993_p5), %s1148_s7, 256, %s1146_s10, %s567_s11   ;;  %v548_v52 = vsel %vm546_vm6, %v547_v46, %v545_v45  ;;  %v555_v53 = vsel %vm553_vm8, %v554_v47, %v552_v49  ;;  %v523_v56 = vand.u32 2147483647, %v521_v54  ;;  %v524_v57 = vmul.f32 %v522_v55, %v1115_v16 }
 0x152   : > { %v557_v59 = vadd.f32 %v555_v53, %v548_v52  ;;  %s692_s6 = sshll.u32 %s1232_s22, 3  ;;  %vm563_vm9 = vcmask 1043456  }
 0x153   : > { %v525_v58 = vmul.f32 %v523_v56, %v1123_v19  ;;  %s258_s9 = scalar_lea.vmem %s1218_s5, %s692_s6 }
 0x154   : > { %v562_v62 = vsel %vm475_vm2, %v1130_v31, %v557_v59 }
 0x155   : > { %v558_v60 = vadd.f32 %v525_v58, %v524_v57 }
 0x157   : > { %v560_v61 = vrot.slane %v558_v60, 7 }
 0x159   : > { %v564_v63 = vsel %vm563_vm9, %v562_v62, %v560_v61 }
 0x15a   : > { %565 = vst [vmem:[%s258_s9] sm:$0x7f] %v564_v63 }
 0x15b PF: > { %p820_p5 = scmp.ge.s32.totalorder %s921_s21, 2  ;;  %s600_s7 = sand.u32 1, %s909_s18  }
 0x15c   : > { %s601_s22 = scalar_lea.sflag [#allocation3], %s600_s7 }
 0x15d   : > { %p817_p3 = pnand %p820_p5, %p997_p6 }
 0x15f   : > { %904 = dma.done.wait (!%p817_p3), %s601_s22, 256  }
 0x160   : > { %906 = vsyncadd (!%p817_p3), %s601_s22, 4294967040  ;;  %p16_p4 = scmp.ge.s32.totalorder %s980_s24, 4   ;;  %s1223_s18 = smov %s913_s19 }
 0x161   : > { %s1224_s19 = smov %s917_s20  ;;  %s1225_s20 = smov %s991_s27 }
 0x162   : > { %s1226_s21 = smov %s980_s24  ;;  %18 = sbr.rel (!%p16_p4) target bundleno = 3 (0x3), region = 86 }
 0x169   :  { %613 = vsyncpa [#allocation3], 1 }
 0x16a   :  { %615 = vsyncpa [#allocation3 + $0x1], 1 }

</bundles_post_ra>
